<compile_context>
chip_gen: v6e
topology: v6e:2x2x1
jax: 0.10.0
libtpu: 0.0.40
codegen_flags: <defaults>
</compile_context>

<pallas_src>
import jax
import jax.numpy as jnp
from jax.experimental import pallas as pl
from jax.experimental.pallas import tpu as pltpu

_LANES = 128


def _disc_kernel(emb_ref, pos_ref, w1a_ref, w1b_ref, b1_ref, w2_ref, b2_ref,
                 out_ref):
    f32 = jnp.float32
    # fc1 applied to the (virtual) concatenation, split into two matmuls.
    h = (jnp.dot(emb_ref[...], w1a_ref[...], preferred_element_type=f32)
         + jnp.dot(pos_ref[...], w1b_ref[...], preferred_element_type=f32)
         + b1_ref[...])
    h = jnp.maximum(h, 0.0)                                   # ReLU
    # fc2, lane-padded to 128 output columns (only column 0 is meaningful).
    out_ref[...] = (jnp.dot(h, w2_ref[...], preferred_element_type=f32)
                    + b2_ref[...])


@jax.jit
def discriminator_forward(embeddings, positive, params):
    b, d2 = embeddings.shape
    w1 = params["w1"]          # (2*D2, H)  == fc1.weight.T
    b1 = params["b1"]          # (H,)
    w2 = params["w2"]          # (H, 1)     == fc2.weight.T
    b2 = params["b2"]          # (1,)
    h = w1.shape[1]

    w1a = w1[:d2, :]
    w1b = w1[d2:, :]
    b1r = b1.reshape(1, h)
    # Lane-dense output head: pad fc2 to 128 columns (cols 1..127 are zero).
    w2p = jnp.zeros((h, _LANES), jnp.float32).at[:, :1].set(w2)
    b2p = jnp.zeros((1, _LANES), jnp.float32).at[:, :1].set(b2.reshape(1, 1))

    # Row tiling: pad the batch to a multiple of the row tile (sublane = 8).
    tb = min(128, -(-b // 8) * 8)
    b_pad = -(-b // tb) * tb
    if b_pad != b:
        pad = ((0, b_pad - b), (0, 0))
        emb_p = jnp.pad(embeddings, pad)
        pos_p = jnp.pad(positive, pad)
    else:
        emb_p, pos_p = embeddings, positive

    out = pl.pallas_call(
        _disc_kernel,
        out_shape=jax.ShapeDtypeStruct((b_pad, _LANES), jnp.float32),
        grid=(b_pad // tb,),
        in_specs=[
            pl.BlockSpec((tb, d2), lambda i: (i, 0)),       # embeddings rows
            pl.BlockSpec((tb, d2), lambda i: (i, 0)),       # positive rows
            pl.BlockSpec((d2, h), lambda i: (0, 0)),        # W1[:D2]
            pl.BlockSpec((d2, h), lambda i: (0, 0)),        # W1[D2:]
            pl.BlockSpec((1, h), lambda i: (0, 0)),         # b1
            pl.BlockSpec((h, _LANES), lambda i: (0, 0)),    # W2 (lane-padded)
            pl.BlockSpec((1, _LANES), lambda i: (0, 0)),    # b2 (lane-padded)
        ],
        out_specs=pl.BlockSpec((tb, _LANES), lambda i: (i, 0)),
        compiler_params=pltpu.CompilerParams(
            dimension_semantics=("parallel",)),
    )(emb_p, pos_p, w1a, w1b, b1r, w2p, b2p)

    return out[:b, :1]


if __name__ == "__main__":
    # args implied by the module: second_gcn_dimensions=32 -> input_size=64,
    # dis_hidden_dimensions=16.  Batch of 4 (embedding, positive) pairs.
    B, D2, H = 4, 32, 16

    key = jax.random.PRNGKey(0)
    k_emb, k_pos, k_b1, k_b2 = jax.random.split(key, 4)

    # torch.nn.init.constant(fcX.weight, 0.01); biases keep a (deterministic)
    # small random init, mirroring torch's default bias init being non-constant.
    params = {
        "w1": jnp.full((2 * D2, H), 0.01, jnp.float32),
        "b1": jax.random.normal(k_b1, (H,), jnp.float32) * 0.01,
        "w2": jnp.full((H, 1), 0.01, jnp.float32),
        "b2": jax.random.normal(k_b2, (1,), jnp.float32) * 0.01,
    }

    embeddings = jax.random.normal(k_emb, (B, D2), jnp.float32)
    positive = jax.random.normal(k_pos, (B, D2), jnp.float32)

    pre = discriminator_forward(embeddings, positive, params)
    jax.block_until_ready(pre)

    # Pure-JAX reference of the PyTorch forward.
    cat = jnp.concatenate([embeddings, positive], axis=-1)
    ref = (jnp.maximum(cat @ params["w1"] + params["b1"], 0.0)
           @ params["w2"] + params["b2"])

    assert pre.shape == (B, 1)
    assert jnp.allclose(pre, ref, atol=1e-5, rtol=1e-5)
    print("KERNEL_OK")
</pallas_src>

<mosaic_0001>
module attributes {stable_mosaic.version = 11 : i64} {
  func.func @_disc_kernel(%arg0: i32, %arg1: memref<8x32xf32, #tpu.memory_space<vmem>>, %arg2: memref<8x32xf32, #tpu.memory_space<vmem>>, %arg3: memref<32x16xf32, #tpu.memory_space<vmem>>, %arg4: memref<32x16xf32, #tpu.memory_space<vmem>>, %arg5: memref<1x16xf32, #tpu.memory_space<vmem>>, %arg6: memref<16x128xf32, #tpu.memory_space<vmem>>, %arg7: memref<1x128xf32, #tpu.memory_space<vmem>>, %arg8: memref<8x128xf32, #tpu.memory_space<vmem>>) attributes {dimension_semantics = [#tpu.dimension_semantics<parallel>], iteration_bounds = array<i64: 1>, scalar_prefetch = 0 : i64, scratch_operands = 0 : i64, tpu.core_type = #tpu.core_type<tc>, window_params = [{transform_indices = @transform_0, window_bounds = array<i64: 8, 32>}, {transform_indices = @transform_1, window_bounds = array<i64: 8, 32>}, {pipeline_mode = #tpu.pipeline_mode<synchronous>, transform_indices = @transform_2, window_bounds = array<i64: 32, 16>}, {pipeline_mode = #tpu.pipeline_mode<synchronous>, transform_indices = @transform_3, window_bounds = array<i64: 32, 16>}, {pipeline_mode = #tpu.pipeline_mode<synchronous>, transform_indices = @transform_4, window_bounds = array<i64: 1, 16>}, {pipeline_mode = #tpu.pipeline_mode<synchronous>, transform_indices = @transform_5, window_bounds = array<i64: 16, 128>}, {pipeline_mode = #tpu.pipeline_mode<synchronous>, transform_indices = @transform_6, window_bounds = array<i64: 1, 128>}, {transform_indices = @transform_7, window_bounds = array<i64: 8, 128>}]} {
    %c0 = arith.constant 0 : index
    %c0_0 = arith.constant 0 : index
    %0 = vector.load %arg1[%c0, %c0_0] : memref<8x32xf32, #tpu.memory_space<vmem>>, vector<8x32xf32>
    %c0_1 = arith.constant 0 : index
    %c0_2 = arith.constant 0 : index
    %1 = vector.load %arg3[%c0_1, %c0_2] : memref<32x16xf32, #tpu.memory_space<vmem>>, vector<32x16xf32>
    %cst = arith.constant dense<0.000000e+00> : vector<8x16xf32>
    %2 = tpu.matmul %0, %1, %cst {dimension_numbers = #tpu.dot_dimension_numbers<[1], [0], [0], [1], [0, 0, 1, 1], [], []>} : vector<8x32xf32>, vector<32x16xf32>, vector<8x16xf32> -> vector<8x16xf32>
    %c0_3 = arith.constant 0 : index
    %c0_4 = arith.constant 0 : index
    %3 = vector.load %arg2[%c0_3, %c0_4] : memref<8x32xf32, #tpu.memory_space<vmem>>, vector<8x32xf32>
    %c0_5 = arith.constant 0 : index
    %c0_6 = arith.constant 0 : index
    %4 = vector.load %arg4[%c0_5, %c0_6] : memref<32x16xf32, #tpu.memory_space<vmem>>, vector<32x16xf32>
    %cst_7 = arith.constant dense<0.000000e+00> : vector<8x16xf32>
    %5 = tpu.matmul %3, %4, %cst_7 {dimension_numbers = #tpu.dot_dimension_numbers<[1], [0], [0], [1], [0, 0, 1, 1], [], []>} : vector<8x32xf32>, vector<32x16xf32>, vector<8x16xf32> -> vector<8x16xf32>
    %6 = arith.addf %2, %5 : vector<8x16xf32>
    %c0_8 = arith.constant 0 : index
    %c0_9 = arith.constant 0 : index
    %7 = vector.load %arg5[%c0_8, %c0_9] : memref<1x16xf32, #tpu.memory_space<vmem>>, vector<1x16xf32>
    %8 = vector.broadcast %7 : vector<1x16xf32> to vector<8x16xf32>
    %9 = arith.addf %6, %8 : vector<8x16xf32>
    %cst_10 = arith.constant 0.000000e+00 : f32
    %10 = vector.broadcast %cst_10 : f32 to vector<8x16xf32>
    %11 = arith.maximumf %9, %10 : vector<8x16xf32>
    %c0_11 = arith.constant 0 : index
    %c0_12 = arith.constant 0 : index
    %12 = vector.load %arg6[%c0_11, %c0_12] : memref<16x128xf32, #tpu.memory_space<vmem>>, vector<16x128xf32>
    %cst_13 = arith.constant dense<0.000000e+00> : vector<8x128xf32>
    %13 = tpu.matmul %11, %12, %cst_13 {dimension_numbers = #tpu.dot_dimension_numbers<[1], [0], [0], [1], [0, 0, 1, 1], [], []>} : vector<8x16xf32>, vector<16x128xf32>, vector<8x128xf32> -> vector<8x128xf32>
    %c0_14 = arith.constant 0 : index
    %c0_15 = arith.constant 0 : index
    %14 = vector.load %arg7[%c0_14, %c0_15] : memref<1x128xf32, #tpu.memory_space<vmem>>, vector<1x128xf32>
    %15 = vector.broadcast %14 : vector<1x128xf32> to vector<8x128xf32>
    %16 = arith.addf %13, %15 : vector<8x128xf32>
    %c0_16 = arith.constant 0 : index
    %c0_17 = arith.constant 0 : index
    %17 = vector.load %arg8[%c0_16, %c0_17] : memref<8x128xf32, #tpu.memory_space<vmem>>, vector<8x128xf32>
    tpu.vector_store %arg8[%c0_16, %c0_17], %16 {strides = array<i32>} : memref<8x128xf32, #tpu.memory_space<vmem>>, vector<8x128xf32>,
    return
  }
  func.func @transform_0(%arg0: i32) -> (i32, i32) {
    %c0_i32 = arith.constant 0 : i32
    %c0_i32_0 = arith.constant 0 : i32
    return %arg0, %c0_i32 : i32, i32
  }
  func.func @transform_1(%arg0: i32) -> (i32, i32) {
    %c0_i32 = arith.constant 0 : i32
    %c0_i32_0 = arith.constant 0 : i32
    return %arg0, %c0_i32 : i32, i32
  }
  func.func @transform_2(%arg0: i32) -> (i32, i32) {
    %c0_i32 = arith.constant 0 : i32
    %c0_i32_0 = arith.constant 0 : i32
    %c0_i32_1 = arith.constant 0 : i32
    return %c0_i32, %c0_i32_0 : i32, i32
  }
  func.func @transform_3(%arg0: i32) -> (i32, i32) {
    %c0_i32 = arith.constant 0 : i32
    %c0_i32_0 = arith.constant 0 : i32
    %c0_i32_1 = arith.constant 0 : i32
    return %c0_i32, %c0_i32_0 : i32, i32
  }
  func.func @transform_4(%arg0: i32) -> (i32, i32) {
    %c0_i32 = arith.constant 0 : i32
    %c0_i32_0 = arith.constant 0 : i32
    %c0_i32_1 = arith.constant 0 : i32
    return %c0_i32, %c0_i32_0 : i32, i32
  }
  func.func @transform_5(%arg0: i32) -> (i32, i32) {
    %c0_i32 = arith.constant 0 : i32
    %c0_i32_0 = arith.constant 0 : i32
    %c0_i32_1 = arith.constant 0 : i32
    return %c0_i32, %c0_i32_0 : i32, i32
  }
  func.func @transform_6(%arg0: i32) -> (i32, i32) {
    %c0_i32 = arith.constant 0 : i32
    %c0_i32_0 = arith.constant 0 : i32
    %c0_i32_1 = arith.constant 0 : i32
    return %c0_i32, %c0_i32_0 : i32, i32
  }
  func.func @transform_7(%arg0: i32) -> (i32, i32) {
    %c0_i32 = arith.constant 0 : i32
    %c0_i32_0 = arith.constant 0 : i32
    return %arg0, %c0_i32 : i32, i32
  }
}

</mosaic_0001>

<bundles_post_ra>
// kernel: discriminator_forward.1
= control target key start
LH: loop header
LB: loop body
LE: loop exit
PB: predicated region body
PF: predicated region fallthrough
CT: control target
= control target key end

     0   :  { %v329_v0 = vmov 0.0   ;;  %vm36_vm0 = vcmask 261120   ;;  %vm330_vm1 = vmmov 0   ;;  %vm201_vm2 = vcmask 130048   ;;  %s416_s3 = inlined_call_operand.vmem [shape: f32[32,16], index: 3, kind: input, shape index: {}]   ;;  %s417_s2 = inlined_call_operand.vmem [shape: f32[32,16], index: 2, kind: input, shape index: {}]   ;;  %s418_s1 = inlined_call_operand.vmem [shape: f32[8,32], index: 1, kind: input, shape index: {}]   ;;  %s419_s0 = inlined_call_operand.vmem [shape: f32[8,32], index: 0, kind: input, shape index: {}]   ;;  %s420_s5 = inlined_call_operand.vmem [shape: f32[16,128], index: 5, kind: input, shape index: {}]   ;;  %s421_s4 = inlined_call_operand.vmem [shape: f32[1,16], index: 4, kind: input, shape index: {}]   ;;  %s422_s6 = inlined_call_operand.vmem [shape: f32[1,128], index: 6, kind: input, shape index: {}]   ;;  %s423_s7 = inlined_call_operand.vmem [shape: f32[8,128], index: 7, kind: output, shape index: {}]  }
   0x1   :  { %298 = vmatprep.subr.mxu0 %v329_v0  ;;  %309 = vmatprep.subr.mxu1 %v329_v0  ;;  %v35_v1 = vld [vmem:[%s416_s3 + $0x18] sm:$0xff]  ;;  %v34_v3 = vld [vmem:[%s416_s3 + $0x10] sm:$0xff]  ;;  %v33_v5 = vld [vmem:[%s416_s3 + $0x8] sm:$0xff] }
   0x2   :  { %v30_v2 = vld [vmem:[%s417_s2 + $0x18] sm:$0xff]  ;;  %299 = vmatpush3.msra.mxu0 %v35_v1  ;;  %v29_v4 = vld [vmem:[%s417_s2 + $0x10] sm:$0xff]  ;;  %v28_v6 = vld [vmem:[%s417_s2 + $0x8] sm:$0xff]  ;;  %306 = vmatprep.mubr.msk.f32.mxu0 %vm330_vm1, %v329_v0 }
   0x3   :  { %310 = vmatpush3.msra.mxu1 %v30_v2  ;;  %300 = vmatprep.subr.mxu0 %v329_v0  ;;  %v32_v7 = vld [vmem:[%s416_s3] sm:$0xff]  ;;  %v193_v11 = vld [vmem:[%s420_s5 + $0x8] sm:$0xff] }
   0x4   :  { %311 = vmatprep.subr.mxu1 %v329_v0  ;;  %301 = vmatpush3.msra.mxu0 %v34_v3  ;;  %v27_v8 = vld [vmem:[%s417_s2] sm:$0xff] }
   0x5   :  { %312 = vmatpush3.msra.mxu1 %v29_v4  ;;  %302 = vmatprep.subr.mxu0 %v329_v0  ;;  %v31_v9 = vld [vmem:[%s418_s1] sm:$0xff] }
   0x6   :  { %313 = vmatprep.subr.mxu1 %v329_v0  ;;  %303 = vmatpush3.msra.mxu0 %v33_v5  ;;  %v26_v10 = vld [vmem:[%s419_s0] sm:$0xff] }
   0x7   :  { %314 = vmatpush3.msra.mxu1 %v28_v6  ;;  %304 = vmatprep.subr.mxu0 %v329_v0  ;;  %v192_v12 = vld [vmem:[%s420_s5] sm:$0xff] }
   0x8   :  { %315 = vmatprep.subr.mxu1 %v329_v0  ;;  %305 = vmatpush3.msra.mxu0 %v32_v7  ;;  %v282_v15 = vld [vmem:[%s421_s4] ss:$0 sm:$0xff] }
   0x9   :  { %316 = vmatpush3.msra.mxu1 %v27_v8  ;;  %317 = vmatprep.mubr.msk.f32.mxu1 %vm330_vm1, %v329_v0  ;;  %v283_v21 = vld [vmem:[%s422_s6] ss:$0 sm:$0xff] }
   0xa   :  { %307 = vmatmul.mubr.msk.f32.vlgmr.msra.gmra.mxu0 %vm36_vm0, %v31_v9  ;;  %318 = vmatmul.mubr.msk.f32.vlgmr.msra.gmra.mxu1 %vm36_vm0, %v26_v10 }
   0xb   :  { %320 = vmatprep.subr.mxu0 %v329_v0  ;;  %324 = vmatprep.mubr.msk.f32.mxu0 %vm330_vm1, %v329_v0 }
   0xc   :  { %321 = vmatpush3.msra.mxu0 %v193_v11 }
   0xd   :  { %322 = vmatprep.subr.mxu0 %v329_v0 }
   0xe   :  { %323 = vmatpush3.msra.mxu0 %v192_v12 }
  0xca   :  { %v106_v13 = vpop.f32.mrf.mxu0  ;;  %v179_v14 = vpop.f32.mrf.mxu1 }
  0xcb   :  { %v180_v16 = vadd.f32 %v179_v14, %v106_v13 }
  0xcc   :  { %v308_v17 = vpop.f32.mrf.mxu0  ;;  %v319_v18 = vpop.f32.mrf.mxu1 }
  0xcd   :  { %v190_v19 = vadd.f32 %v282_v15, %v180_v16 }
  0xcf   :  { %v191_v20 = vmax.f32 %v190_v19, 0.0 }
  0xd1   :  { %325 = vmatmul.mubr.msk.f32.vlgmr.msra.gmra.mxu0 %vm201_vm2, %v191_v20 }
 0x191   :  { %v271_v22 = vpop.f32.mrf.mxu0 }
 0x192   :  { %v272_v23 = vadd.f32 %v283_v21, %v271_v22 }
 0x193   :  { %v326_v24 = vpop.f32.mrf.mxu0 }
 0x194   :  { %275 = vst [vmem:[%s423_s7] sm:$0xff] %v272_v23 }

</bundles_post_ra>
